<compile_context>
chip_gen: v7x
topology: tpu7x:2x2x1
jax: 0.10.0
libtpu: 0.0.40
codegen_flags: <defaults>
</compile_context>

<pallas_src>
import functools

import jax
import jax.numpy as jnp
from jax import lax
from jax.experimental import pallas as pl
from jax.experimental.pallas import tpu as pltpu

K = 3            # 3x3 kernels, as in the PyTorch module
_SUBLANE = 8     # f32 sublane tile
_VMEM_LIMIT = 32 * 1024 * 1024   # explicit scoped-VMEM limit (safe on v5e..v7x)
_VMEM_BUDGET = 24 * 1024 * 1024  # per-step budget used when choosing the fold


def _round_up(x, m):
    return (x + m - 1) // m * m


def _estimate_step_vmem_bytes(cin_p, cout_p, lanes):
    """Rough per-grid-step VMEM estimate (f32): double-buffered in/out blocks,
    the im2col scratch, and the live matmul operands/results."""
    f32 = 4
    cmax = max(cin_p, cout_p)
    act = 2 * (cin_p + cout_p) * lanes * f32          # double-buffered blocks
    col = K * K * cmax * lanes * f32                  # im2col scratch
    live = (K * K * cmax + 2 * cout_p) * lanes * f32  # vreg-resident temporaries
    return act + col + live


def _choose_grid(n, cin_p, cout_p, hw):
    """Pick (grid_steps, images_per_step).

    Prefer >= 2 grid steps when the batch is big enough so both v7x
    TensorCores get work; for tiny batches (N <= 3) fold everything into one
    step - step overhead dominates compute there, so one fused step is no
    slower on v7x and ~2x fewer steps on single-TC v5e/v6e.  The fold is
    capped so the per-step VMEM estimate stays inside the budget.
    """
    min_steps = 2 if n >= 4 else 1
    for steps in range(1, n + 1):
        if n % steps != 0 or steps < min_steps:
            continue
        nb = n // steps
        if _estimate_step_vmem_bytes(cin_p, cout_p, nb * hw) <= _VMEM_BUDGET:
            return steps, nb
    return n, 1


def _make_block_kernel(width, hw, nb, cin_p, cout_p):
    """Kernel factory.  Block shapes per step:
       x_ref:   (nb, cin_p, HW)     w1_ref: (cout_p, K*K*cin_p)   b1_ref: (cout_p, 1)
       out_ref: (nb, cout_p, HW)    w2_ref: (cout_p, K*K*cout_p)  b2_ref: (cout_p, 1)
       col_ref: (K*K*max(cin_p,cout_p), nb*HW) f32 VMEM scratch (im2col slab).

    The 3x3 valid conv is an im2col matmul; the im2col rows are built from 9
    cheap lane rotations (pltpu.roll, XLU slot) of each image's flat pixel
    axis.  Roll wrap-around only pollutes columns outside the valid conv
    window, which are never read for valid outputs (requires H,W >= 5,
    stride 1, no padding/dilation - asserted in the wrapper).
    """
    kk_cin = K * K * cin_p
    kk_cout = K * K * cout_p

    def _fill_im2col(col_ref, img, i, c):
        # img: (c, HW).  Writes rows [k*c:(k+1)*c], lanes [i*HW:(i+1)*HW].
        # All offsets are static and (sublane=8, lane=128)-aligned for the
        # tested shapes, so these are clean unmasked stores.
        for ky in range(K):
            for kx in range(K):
                k = ky * K + kx
                s = ky * width + kx
                piece = img if s == 0 else pltpu.roll(img, shift=hw - s, axis=1)
                col_ref[k * c:(k + 1) * c, i * hw:(i + 1) * hw] = piece

    def kernel(x_ref, w1_ref, b1_ref, w2_ref, b2_ref, out_ref, col_ref):
        # ---- conv1 (valid) + bias + ReLU: one im2col matmul over nb images --
        for i in range(nb):
            _fill_im2col(col_ref, x_ref[i], i, cin_p)
        h = jnp.dot(w1_ref[...], col_ref[0:kk_cin, :],
                    preferred_element_type=jnp.float32)
        h = jnp.maximum(h + b1_ref[...], 0.0)              # (cout_p, nb*HW)

        # ---- conv2 (valid) + bias: one im2col matmul over nb images ---------
        for i in range(nb):
            _fill_im2col(col_ref, h[:, i * hw:(i + 1) * hw], i, cout_p)
        y = jnp.dot(w2_ref[...], col_ref[0:kk_cout, :],
                    preferred_element_type=jnp.float32)
        y = y + b2_ref[...]                                 # (cout_p, nb*HW)

        # Lane-dense, unmasked stores (full HW slab per image).
        for i in range(nb):
            out_ref[i] = y[:, i * hw:(i + 1) * hw].astype(out_ref.dtype)

    return kernel


def pack_block_params(w1_oihw, b1, w2_oihw, b2):
    """One-time repack of PyTorch-layout params into kernel layout.

    Call this OUTSIDE the per-forward path (inference weights are static);
    the per-call path then contains no weight transposes at all.
    Channels are zero-padded to multiples of 8 so every im2col piece is
    sublane-tile aligned; the zero rows/columns contribute exactly 0 to the
    MXU contraction, so numerics are unchanged.
    """
    cout, cin = int(w1_oihw.shape[0]), int(w1_oihw.shape[1])
    cin_p = _round_up(cin, _SUBLANE)
    cout_p = _round_up(cout, _SUBLANE)

    # (Cout, Cin, K, K) -> (Cout, K, K, Cin) -> pad channels -> (Coutp, K*K*Cinp)
    w1 = jnp.transpose(w1_oihw, (0, 2, 3, 1))
    w1 = jnp.pad(w1, ((0, cout_p - cout), (0, 0), (0, 0), (0, cin_p - cin)))
    w1_mat = w1.reshape(cout_p, K * K * cin_p)

    w2 = jnp.transpose(w2_oihw, (0, 2, 3, 1))
    w2 = jnp.pad(w2, ((0, cout_p - cout), (0, 0), (0, 0), (0, cout_p - cout)))
    w2_mat = w2.reshape(cout_p, K * K * cout_p)

    b1_col = jnp.pad(b1, (0, cout_p - cout)).reshape(cout_p, 1)
    b2_col = jnp.pad(b2, (0, cout_p - cout)).reshape(cout_p, 1)
    return w1_mat, b1_col, w2_mat, b2_col


@functools.partial(jax.jit, static_argnames=("cout",))
def block_forward(x_nchw, w1_mat, b1_col, w2_mat, b2_col, *, cout):
    """Pallas equivalent of Block.forward.

    x_nchw: (N, Cin, H, W) float32; packed params from pack_block_params.
    Returns (N, Cout, H-4, W-4).
    """
    N, cin, H, W = x_nchw.shape
    cout_p = w1_mat.shape[0]
    cin_p = w1_mat.shape[1] // (K * K)
    # Structural requirements of the roll-based valid-conv trick.
    assert H >= 2 * (K - 1) + 1 and W >= 2 * (K - 1) + 1, "need H,W >= 5"
    assert cin_p == _round_up(cin, _SUBLANE), "packed params don't match x"
    assert cout_p == _round_up(cout, _SUBLANE)

    HW = H * W
    H2, W2 = H - 2 * (K - 1), W - 2 * (K - 1)

    steps, nb = _choose_grid(N, cin_p, cout_p, HW)

    # Free reshape of contiguous NCHW; only the channel zero-pad copies data
    # (tiny), and there are no activation transposes anywhere.
    x_flat = x_nchw.reshape(N, cin, HW)
    if cin_p != cin:
        x_flat = jnp.pad(x_flat, ((0, 0), (0, cin_p - cin), (0, 0)))

    cmax = max(cin_p, cout_p)
    out_flat = pl.pallas_call(
        _make_block_kernel(W, HW, nb, cin_p, cout_p),
        out_shape=jax.ShapeDtypeStruct((N, cout_p, HW), x_nchw.dtype),
        grid_spec=pltpu.PrefetchScalarGridSpec(
            num_scalar_prefetch=0,
            grid=(steps,),  # nb images per step; "parallel" feeds v7x's 2 TCs
            in_specs=[
                pl.BlockSpec((nb, cin_p, HW), lambda b: (b, 0, 0)),
                pl.BlockSpec((cout_p, K * K * cin_p), lambda b: (0, 0)),
                pl.BlockSpec((cout_p, 1), lambda b: (0, 0)),
                pl.BlockSpec((cout_p, K * K * cout_p), lambda b: (0, 0)),
                pl.BlockSpec((cout_p, 1), lambda b: (0, 0)),
            ],
            out_specs=pl.BlockSpec((nb, cout_p, HW), lambda b: (b, 0, 0)),
            scratch_shapes=[pltpu.VMEM((K * K * cmax, nb * HW), jnp.float32)],
        ),
        compiler_params=pltpu.CompilerParams(
            dimension_semantics=("parallel",),
            vmem_limit_bytes=_VMEM_LIMIT),
    )(x_flat, w1_mat, b1_col, w2_mat, b2_col)

    # Full lane-dense slab written by the kernel; the valid "valid"-conv window
    # (and the real output channels) are sliced here.  Kept this way on purpose:
    # unmasked stores are cheapest (esp. v5e), and the extra pass is negligible
    # at these sizes.
    out = out_flat.reshape(N, cout_p, H, W)
    return out[:, :cout, :H2, :W2]


def _reference(x, w1, b1, w2, b2):
    """Pure-JAX NCHW reference matching PyTorch semantics."""
    dn = ("NCHW", "OIHW", "NCHW")
    y = lax.conv_general_dilated(x, w1, (1, 1), "VALID", dimension_numbers=dn)
    y = y + b1.reshape(1, -1, 1, 1)
    y = jnp.maximum(y, 0.0)
    y = lax.conv_general_dilated(y, w2, (1, 1), "VALID", dimension_numbers=dn)
    y = y + b2.reshape(1, -1, 1, 1)
    return y


if __name__ == "__main__":
    # Small deterministic setup: Block(inchannels=4, outchannels=8), x (2,4,16,16)
    N, Cin, Cout, H, W = 2, 4, 8, 16, 16
    key = jax.random.PRNGKey(0)
    kx, kw1, kb1, kw2, kb2 = jax.random.split(key, 5)

    x = jax.random.normal(kx, (N, Cin, H, W), jnp.float32)
    w1 = jax.random.normal(kw1, (Cout, Cin, K, K), jnp.float32) * 0.1
    b1 = jax.random.normal(kb1, (Cout,), jnp.float32) * 0.1
    w2 = jax.random.normal(kw2, (Cout, Cout, K, K), jnp.float32) * 0.1
    b2 = jax.random.normal(kb2, (Cout,), jnp.float32) * 0.1

    # Weight packing done ONCE, outside the per-call path.
    packed = pack_block_params(w1, b1, w2, b2)

    out = jax.block_until_ready(block_forward(x, *packed, cout=Cout))

    ref = jax.block_until_ready(_reference(x, w1, b1, w2, b2))
    assert out.shape == (N, Cout, H - 4, W - 4), out.shape
    assert jnp.allclose(out, ref, atol=1e-4, rtol=1e-4), (
        float(jnp.max(jnp.abs(out - ref))))

    print("KERNEL_OK")
</pallas_src>

<mosaic_0001>
module attributes {stable_mosaic.version = 11 : i64} {
  func.func @kernel(%arg0: i32, %arg1: memref<2x8x256xf32, #tpu.memory_space<vmem>>, %arg2: memref<8x72xf32, #tpu.memory_space<vmem>>, %arg3: memref<8x1xf32, #tpu.memory_space<vmem>>, %arg4: memref<8x72xf32, #tpu.memory_space<vmem>>, %arg5: memref<8x1xf32, #tpu.memory_space<vmem>>, %arg6: memref<2x8x256xf32, #tpu.memory_space<vmem>>, %arg7: memref<72x512xf32, #tpu.memory_space<vmem>>) attributes {dimension_semantics = [#tpu.dimension_semantics<parallel>], iteration_bounds = array<i64: 1>, scalar_prefetch = 0 : i64, scratch_operands = 1 : i64, tpu.core_type = #tpu.core_type<tc>, window_params = [{transform_indices = @transform_0, window_bounds = array<i64: 2, 8, 256>}, {pipeline_mode = #tpu.pipeline_mode<synchronous>, transform_indices = @transform_1, window_bounds = array<i64: 8, 72>}, {pipeline_mode = #tpu.pipeline_mode<synchronous>, transform_indices = @transform_2, window_bounds = array<i64: 8, 1>}, {pipeline_mode = #tpu.pipeline_mode<synchronous>, transform_indices = @transform_3, window_bounds = array<i64: 8, 72>}, {pipeline_mode = #tpu.pipeline_mode<synchronous>, transform_indices = @transform_4, window_bounds = array<i64: 8, 1>}, {transform_indices = @transform_5, window_bounds = array<i64: 2, 8, 256>}]} {
    %c0 = arith.constant 0 : index
    %c0_0 = arith.constant 0 : index
    %c0_1 = arith.constant 0 : index
    %0 = vector.load %arg1[%c0, %c0_0, %c0_1] : memref<2x8x256xf32, #tpu.memory_space<vmem>>, vector<1x8x256xf32>
    %1 = vector.shape_cast %0 : vector<1x8x256xf32> to vector<8x256xf32>
    %c0_2 = arith.constant 0 : index
    %c0_3 = arith.constant 0 : index
    %2 = vector.load %arg7[%c0_2, %c0_3] : memref<72x512xf32, #tpu.memory_space<vmem>>, vector<8x256xf32>
    tpu.vector_store %arg7[%c0_2, %c0_3], %1 {strides = array<i32>} : memref<72x512xf32, #tpu.memory_space<vmem>>, vector<8x256xf32>,
    %c255_i32 = arith.constant 255 : i32
    %3 = tpu.dynamic_rotate %1 by %c255_i32 dim 1 : vector<8x256xf32>, i32 -> vector<8x256xf32>
    %c8 = arith.constant 8 : index
    %c0_4 = arith.constant 0 : index
    %4 = vector.load %arg7[%c8, %c0_4] : memref<72x512xf32, #tpu.memory_space<vmem>>, vector<8x256xf32>
    tpu.vector_store %arg7[%c8, %c0_4], %3 {strides = array<i32>} : memref<72x512xf32, #tpu.memory_space<vmem>>, vector<8x256xf32>,
    %c254_i32 = arith.constant 254 : i32
    %5 = tpu.dynamic_rotate %1 by %c254_i32 dim 1 : vector<8x256xf32>, i32 -> vector<8x256xf32>
    %c16 = arith.constant 16 : index
    %c0_5 = arith.constant 0 : index
    %6 = vector.load %arg7[%c16, %c0_5] : memref<72x512xf32, #tpu.memory_space<vmem>>, vector<8x256xf32>
    tpu.vector_store %arg7[%c16, %c0_5], %5 {strides = array<i32>} : memref<72x512xf32, #tpu.memory_space<vmem>>, vector<8x256xf32>,
    %c240_i32 = arith.constant 240 : i32
    %7 = tpu.dynamic_rotate %1 by %c240_i32 dim 1 : vector<8x256xf32>, i32 -> vector<8x256xf32>
    %c24 = arith.constant 24 : index
    %c0_6 = arith.constant 0 : index
    %8 = vector.load %arg7[%c24, %c0_6] : memref<72x512xf32, #tpu.memory_space<vmem>>, vector<8x256xf32>
    tpu.vector_store %arg7[%c24, %c0_6], %7 {strides = array<i32>} : memref<72x512xf32, #tpu.memory_space<vmem>>, vector<8x256xf32>,
    %c239_i32 = arith.constant 239 : i32
    %9 = tpu.dynamic_rotate %1 by %c239_i32 dim 1 : vector<8x256xf32>, i32 -> vector<8x256xf32>
    %c32 = arith.constant 32 : index
    %c0_7 = arith.constant 0 : index
    %10 = vector.load %arg7[%c32, %c0_7] : memref<72x512xf32, #tpu.memory_space<vmem>>, vector<8x256xf32>
    tpu.vector_store %arg7[%c32, %c0_7], %9 {strides = array<i32>} : memref<72x512xf32, #tpu.memory_space<vmem>>, vector<8x256xf32>,
    %c238_i32 = arith.constant 238 : i32
    %11 = tpu.dynamic_rotate %1 by %c238_i32 dim 1 : vector<8x256xf32>, i32 -> vector<8x256xf32>
    %c40 = arith.constant 40 : index
    %c0_8 = arith.constant 0 : index
    %12 = vector.load %arg7[%c40, %c0_8] : memref<72x512xf32, #tpu.memory_space<vmem>>, vector<8x256xf32>
    tpu.vector_store %arg7[%c40, %c0_8], %11 {strides = array<i32>} : memref<72x512xf32, #tpu.memory_space<vmem>>, vector<8x256xf32>,
    %c224_i32 = arith.constant 224 : i32
    %13 = tpu.dynamic_rotate %1 by %c224_i32 dim 1 : vector<8x256xf32>, i32 -> vector<8x256xf32>
    %c48 = arith.constant 48 : index
    %c0_9 = arith.constant 0 : index
    %14 = vector.load %arg7[%c48, %c0_9] : memref<72x512xf32, #tpu.memory_space<vmem>>, vector<8x256xf32>
    tpu.vector_store %arg7[%c48, %c0_9], %13 {strides = array<i32>} : memref<72x512xf32, #tpu.memory_space<vmem>>, vector<8x256xf32>,
    %c223_i32 = arith.constant 223 : i32
    %15 = tpu.dynamic_rotate %1 by %c223_i32 dim 1 : vector<8x256xf32>, i32 -> vector<8x256xf32>
    %c56 = arith.constant 56 : index
    %c0_10 = arith.constant 0 : index
    %16 = vector.load %arg7[%c56, %c0_10] : memref<72x512xf32, #tpu.memory_space<vmem>>, vector<8x256xf32>
    tpu.vector_store %arg7[%c56, %c0_10], %15 {strides = array<i32>} : memref<72x512xf32, #tpu.memory_space<vmem>>, vector<8x256xf32>,
    %c222_i32 = arith.constant 222 : i32
    %17 = tpu.dynamic_rotate %1 by %c222_i32 dim 1 : vector<8x256xf32>, i32 -> vector<8x256xf32>
    %c64 = arith.constant 64 : index
    %c0_11 = arith.constant 0 : index
    %18 = vector.load %arg7[%c64, %c0_11] : memref<72x512xf32, #tpu.memory_space<vmem>>, vector<8x256xf32>
    tpu.vector_store %arg7[%c64, %c0_11], %17 {strides = array<i32>} : memref<72x512xf32, #tpu.memory_space<vmem>>, vector<8x256xf32>,
    %c1 = arith.constant 1 : index
    %c0_12 = arith.constant 0 : index
    %c0_13 = arith.constant 0 : index
    %19 = vector.load %arg1[%c1, %c0_12, %c0_13] : memref<2x8x256xf32, #tpu.memory_space<vmem>>, vector<1x8x256xf32>
    %20 = vector.shape_cast %19 : vector<1x8x256xf32> to vector<8x256xf32>
    %c0_14 = arith.constant 0 : index
    %c256 = arith.constant 256 : index
    %21 = vector.load %arg7[%c0_14, %c256] : memref<72x512xf32, #tpu.memory_space<vmem>>, vector<8x256xf32>
    tpu.vector_store %arg7[%c0_14, %c256], %20 {strides = array<i32>} : memref<72x512xf32, #tpu.memory_space<vmem>>, vector<8x256xf32>,
    %c255_i32_15 = arith.constant 255 : i32
    %22 = tpu.dynamic_rotate %20 by %c255_i32_15 dim 1 : vector<8x256xf32>, i32 -> vector<8x256xf32>
    %c8_16 = arith.constant 8 : index
    %c256_17 = arith.constant 256 : index
    %23 = vector.load %arg7[%c8_16, %c256_17] : memref<72x512xf32, #tpu.memory_space<vmem>>, vector<8x256xf32>
    tpu.vector_store %arg7[%c8_16, %c256_17], %22 {strides = array<i32>} : memref<72x512xf32, #tpu.memory_space<vmem>>, vector<8x256xf32>,
    %c254_i32_18 = arith.constant 254 : i32
    %24 = tpu.dynamic_rotate %20 by %c254_i32_18 dim 1 : vector<8x256xf32>, i32 -> vector<8x256xf32>
    %c16_19 = arith.constant 16 : index
    %c256_20 = arith.constant 256 : index
    %25 = vector.load %arg7[%c16_19, %c256_20] : memref<72x512xf32, #tpu.memory_space<vmem>>, vector<8x256xf32>
    tpu.vector_store %arg7[%c16_19, %c256_20], %24 {strides = array<i32>} : memref<72x512xf32, #tpu.memory_space<vmem>>, vector<8x256xf32>,
    %c240_i32_21 = arith.constant 240 : i32
    %26 = tpu.dynamic_rotate %20 by %c240_i32_21 dim 1 : vector<8x256xf32>, i32 -> vector<8x256xf32>
    %c24_22 = arith.constant 24 : index
    %c256_23 = arith.constant 256 : index
    %27 = vector.load %arg7[%c24_22, %c256_23] : memref<72x512xf32, #tpu.memory_space<vmem>>, vector<8x256xf32>
    tpu.vector_store %arg7[%c24_22, %c256_23], %26 {strides = array<i32>} : memref<72x512xf32, #tpu.memory_space<vmem>>, vector<8x256xf32>,
    %c239_i32_24 = arith.constant 239 : i32
    %28 = tpu.dynamic_rotate %20 by %c239_i32_24 dim 1 : vector<8x256xf32>, i32 -> vector<8x256xf32>
    %c32_25 = arith.constant 32 : index
    %c256_26 = arith.constant 256 : index
    %29 = vector.load %arg7[%c32_25, %c256_26] : memref<72x512xf32, #tpu.memory_space<vmem>>, vector<8x256xf32>
    tpu.vector_store %arg7[%c32_25, %c256_26], %28 {strides = array<i32>} : memref<72x512xf32, #tpu.memory_space<vmem>>, vector<8x256xf32>,
    %c238_i32_27 = arith.constant 238 : i32
    %30 = tpu.dynamic_rotate %20 by %c238_i32_27 dim 1 : vector<8x256xf32>, i32 -> vector<8x256xf32>
    %c40_28 = arith.constant 40 : index
    %c256_29 = arith.constant 256 : index
    %31 = vector.load %arg7[%c40_28, %c256_29] : memref<72x512xf32, #tpu.memory_space<vmem>>, vector<8x256xf32>
    tpu.vector_store %arg7[%c40_28, %c256_29], %30 {strides = array<i32>} : memref<72x512xf32, #tpu.memory_space<vmem>>, vector<8x256xf32>,
    %c224_i32_30 = arith.constant 224 : i32
    %32 = tpu.dynamic_rotate %20 by %c224_i32_30 dim 1 : vector<8x256xf32>, i32 -> vector<8x256xf32>
    %c48_31 = arith.constant 48 : index
    %c256_32 = arith.constant 256 : index
    %33 = vector.load %arg7[%c48_31, %c256_32] : memref<72x512xf32, #tpu.memory_space<vmem>>, vector<8x256xf32>
    tpu.vector_store %arg7[%c48_31, %c256_32], %32 {strides = array<i32>} : memref<72x512xf32, #tpu.memory_space<vmem>>, vector<8x256xf32>,
    %c223_i32_33 = arith.constant 223 : i32
    %34 = tpu.dynamic_rotate %20 by %c223_i32_33 dim 1 : vector<8x256xf32>, i32 -> vector<8x256xf32>
    %c56_34 = arith.constant 56 : index
    %c256_35 = arith.constant 256 : index
    %35 = vector.load %arg7[%c56_34, %c256_35] : memref<72x512xf32, #tpu.memory_space<vmem>>, vector<8x256xf32>
    tpu.vector_store %arg7[%c56_34, %c256_35], %34 {strides = array<i32>} : memref<72x512xf32, #tpu.memory_space<vmem>>, vector<8x256xf32>,
    %c222_i32_36 = arith.constant 222 : i32
    %36 = tpu.dynamic_rotate %20 by %c222_i32_36 dim 1 : vector<8x256xf32>, i32 -> vector<8x256xf32>
    %c64_37 = arith.constant 64 : index
    %c256_38 = arith.constant 256 : index
    %37 = vector.load %arg7[%c64_37, %c256_38] : memref<72x512xf32, #tpu.memory_space<vmem>>, vector<8x256xf32>
    tpu.vector_store %arg7[%c64_37, %c256_38], %36 {strides = array<i32>} : memref<72x512xf32, #tpu.memory_space<vmem>>, vector<8x256xf32>,
    %c0_39 = arith.constant 0 : index
    %c0_40 = arith.constant 0 : index
    %38 = vector.load %arg2[%c0_39, %c0_40] : memref<8x72xf32, #tpu.memory_space<vmem>>, vector<8x72xf32>
    %c0_41 = arith.constant 0 : index
    %c0_42 = arith.constant 0 : index
    %39 = vector.load %arg7[%c0_41, %c0_42] : memref<72x512xf32, #tpu.memory_space<vmem>>, vector<72x512xf32>
    %cst = arith.constant dense<0.000000e+00> : vector<8x512xf32>
    %40 = tpu.matmul %38, %39, %cst {dimension_numbers = #tpu.dot_dimension_numbers<[1], [0], [0], [1], [0, 0, 1, 1], [], []>} : vector<8x72xf32>, vector<72x512xf32>, vector<8x512xf32> -> vector<8x512xf32>
    %c0_43 = arith.constant 0 : index
    %c0_44 = arith.constant 0 : index
    %41 = vector.load %arg3[%c0_43, %c0_44] : memref<8x1xf32, #tpu.memory_space<vmem>>, vector<8x1xf32>
    %42 = vector.broadcast %41 : vector<8x1xf32> to vector<8x512xf32>
    %43 = arith.addf %40, %42 : vector<8x512xf32>
    %cst_45 = arith.constant 0.000000e+00 : f32
    %44 = vector.broadcast %cst_45 : f32 to vector<8x512xf32>
    %45 = arith.maximumf %43, %44 : vector<8x512xf32>
    %46 = vector.extract_strided_slice %45 {offsets = [0, 0], sizes = [8, 256], strides = [1, 1]} : vector<8x512xf32> to vector<8x256xf32>
    %c0_46 = arith.constant 0 : index
    %c0_47 = arith.constant 0 : index
    %47 = vector.load %arg7[%c0_46, %c0_47] : memref<72x512xf32, #tpu.memory_space<vmem>>, vector<8x256xf32>
    tpu.vector_store %arg7[%c0_46, %c0_47], %46 {strides = array<i32>} : memref<72x512xf32, #tpu.memory_space<vmem>>, vector<8x256xf32>,
    %c255_i32_48 = arith.constant 255 : i32
    %48 = tpu.dynamic_rotate %46 by %c255_i32_48 dim 1 : vector<8x256xf32>, i32 -> vector<8x256xf32>
    %c8_49 = arith.constant 8 : index
    %c0_50 = arith.constant 0 : index
    %49 = vector.load %arg7[%c8_49, %c0_50] : memref<72x512xf32, #tpu.memory_space<vmem>>, vector<8x256xf32>
    tpu.vector_store %arg7[%c8_49, %c0_50], %48 {strides = array<i32>} : memref<72x512xf32, #tpu.memory_space<vmem>>, vector<8x256xf32>,
    %c254_i32_51 = arith.constant 254 : i32
    %50 = tpu.dynamic_rotate %46 by %c254_i32_51 dim 1 : vector<8x256xf32>, i32 -> vector<8x256xf32>
    %c16_52 = arith.constant 16 : index
    %c0_53 = arith.constant 0 : index
    %51 = vector.load %arg7[%c16_52, %c0_53] : memref<72x512xf32, #tpu.memory_space<vmem>>, vector<8x256xf32>
    tpu.vector_store %arg7[%c16_52, %c0_53], %50 {strides = array<i32>} : memref<72x512xf32, #tpu.memory_space<vmem>>, vector<8x256xf32>,
    %c240_i32_54 = arith.constant 240 : i32
    %52 = tpu.dynamic_rotate %46 by %c240_i32_54 dim 1 : vector<8x256xf32>, i32 -> vector<8x256xf32>
    %c24_55 = arith.constant 24 : index
    %c0_56 = arith.constant 0 : index
    %53 = vector.load %arg7[%c24_55, %c0_56] : memref<72x512xf32, #tpu.memory_space<vmem>>, vector<8x256xf32>
    tpu.vector_store %arg7[%c24_55, %c0_56], %52 {strides = array<i32>} : memref<72x512xf32, #tpu.memory_space<vmem>>, vector<8x256xf32>,
    %c239_i32_57 = arith.constant 239 : i32
    %54 = tpu.dynamic_rotate %46 by %c239_i32_57 dim 1 : vector<8x256xf32>, i32 -> vector<8x256xf32>
    %c32_58 = arith.constant 32 : index
    %c0_59 = arith.constant 0 : index
    %55 = vector.load %arg7[%c32_58, %c0_59] : memref<72x512xf32, #tpu.memory_space<vmem>>, vector<8x256xf32>
    tpu.vector_store %arg7[%c32_58, %c0_59], %54 {strides = array<i32>} : memref<72x512xf32, #tpu.memory_space<vmem>>, vector<8x256xf32>,
    %c238_i32_60 = arith.constant 238 : i32
    %56 = tpu.dynamic_rotate %46 by %c238_i32_60 dim 1 : vector<8x256xf32>, i32 -> vector<8x256xf32>
    %c40_61 = arith.constant 40 : index
    %c0_62 = arith.constant 0 : index
    %57 = vector.load %arg7[%c40_61, %c0_62] : memref<72x512xf32, #tpu.memory_space<vmem>>, vector<8x256xf32>
    tpu.vector_store %arg7[%c40_61, %c0_62], %56 {strides = array<i32>} : memref<72x512xf32, #tpu.memory_space<vmem>>, vector<8x256xf32>,
    %c224_i32_63 = arith.constant 224 : i32
    %58 = tpu.dynamic_rotate %46 by %c224_i32_63 dim 1 : vector<8x256xf32>, i32 -> vector<8x256xf32>
    %c48_64 = arith.constant 48 : index
    %c0_65 = arith.constant 0 : index
    %59 = vector.load %arg7[%c48_64, %c0_65] : memref<72x512xf32, #tpu.memory_space<vmem>>, vector<8x256xf32>
    tpu.vector_store %arg7[%c48_64, %c0_65], %58 {strides = array<i32>} : memref<72x512xf32, #tpu.memory_space<vmem>>, vector<8x256xf32>,
    %c223_i32_66 = arith.constant 223 : i32
    %60 = tpu.dynamic_rotate %46 by %c223_i32_66 dim 1 : vector<8x256xf32>, i32 -> vector<8x256xf32>
    %c56_67 = arith.constant 56 : index
    %c0_68 = arith.constant 0 : index
    %61 = vector.load %arg7[%c56_67, %c0_68] : memref<72x512xf32, #tpu.memory_space<vmem>>, vector<8x256xf32>
    tpu.vector_store %arg7[%c56_67, %c0_68], %60 {strides = array<i32>} : memref<72x512xf32, #tpu.memory_space<vmem>>, vector<8x256xf32>,
    %c222_i32_69 = arith.constant 222 : i32
    %62 = tpu.dynamic_rotate %46 by %c222_i32_69 dim 1 : vector<8x256xf32>, i32 -> vector<8x256xf32>
    %c64_70 = arith.constant 64 : index
    %c0_71 = arith.constant 0 : index
    %63 = vector.load %arg7[%c64_70, %c0_71] : memref<72x512xf32, #tpu.memory_space<vmem>>, vector<8x256xf32>
    tpu.vector_store %arg7[%c64_70, %c0_71], %62 {strides = array<i32>} : memref<72x512xf32, #tpu.memory_space<vmem>>, vector<8x256xf32>,
    %64 = vector.extract_strided_slice %45 {offsets = [0, 256], sizes = [8, 256], strides = [1, 1]} : vector<8x512xf32> to vector<8x256xf32>
    %c0_72 = arith.constant 0 : index
    %c256_73 = arith.constant 256 : index
    %65 = vector.load %arg7[%c0_72, %c256_73] : memref<72x512xf32, #tpu.memory_space<vmem>>, vector<8x256xf32>
    tpu.vector_store %arg7[%c0_72, %c256_73], %64 {strides = array<i32>} : memref<72x512xf32, #tpu.memory_space<vmem>>, vector<8x256xf32>,
    %c255_i32_74 = arith.constant 255 : i32
    %66 = tpu.dynamic_rotate %64 by %c255_i32_74 dim 1 : vector<8x256xf32>, i32 -> vector<8x256xf32>
    %c8_75 = arith.constant 8 : index
    %c256_76 = arith.constant 256 : index
    %67 = vector.load %arg7[%c8_75, %c256_76] : memref<72x512xf32, #tpu.memory_space<vmem>>, vector<8x256xf32>
    tpu.vector_store %arg7[%c8_75, %c256_76], %66 {strides = array<i32>} : memref<72x512xf32, #tpu.memory_space<vmem>>, vector<8x256xf32>,
    %c254_i32_77 = arith.constant 254 : i32
    %68 = tpu.dynamic_rotate %64 by %c254_i32_77 dim 1 : vector<8x256xf32>, i32 -> vector<8x256xf32>
    %c16_78 = arith.constant 16 : index
    %c256_79 = arith.constant 256 : index
    %69 = vector.load %arg7[%c16_78, %c256_79] : memref<72x512xf32, #tpu.memory_space<vmem>>, vector<8x256xf32>
    tpu.vector_store %arg7[%c16_78, %c256_79], %68 {strides = array<i32>} : memref<72x512xf32, #tpu.memory_space<vmem>>, vector<8x256xf32>,
    %c240_i32_80 = arith.constant 240 : i32
    %70 = tpu.dynamic_rotate %64 by %c240_i32_80 dim 1 : vector<8x256xf32>, i32 -> vector<8x256xf32>
    %c24_81 = arith.constant 24 : index
    %c256_82 = arith.constant 256 : index
    %71 = vector.load %arg7[%c24_81, %c256_82] : memref<72x512xf32, #tpu.memory_space<vmem>>, vector<8x256xf32>
    tpu.vector_store %arg7[%c24_81, %c256_82], %70 {strides = array<i32>} : memref<72x512xf32, #tpu.memory_space<vmem>>, vector<8x256xf32>,
    %c239_i32_83 = arith.constant 239 : i32
    %72 = tpu.dynamic_rotate %64 by %c239_i32_83 dim 1 : vector<8x256xf32>, i32 -> vector<8x256xf32>
    %c32_84 = arith.constant 32 : index
    %c256_85 = arith.constant 256 : index
    %73 = vector.load %arg7[%c32_84, %c256_85] : memref<72x512xf32, #tpu.memory_space<vmem>>, vector<8x256xf32>
    tpu.vector_store %arg7[%c32_84, %c256_85], %72 {strides = array<i32>} : memref<72x512xf32, #tpu.memory_space<vmem>>, vector<8x256xf32>,
    %c238_i32_86 = arith.constant 238 : i32
    %74 = tpu.dynamic_rotate %64 by %c238_i32_86 dim 1 : vector<8x256xf32>, i32 -> vector<8x256xf32>
    %c40_87 = arith.constant 40 : index
    %c256_88 = arith.constant 256 : index
    %75 = vector.load %arg7[%c40_87, %c256_88] : memref<72x512xf32, #tpu.memory_space<vmem>>, vector<8x256xf32>
    tpu.vector_store %arg7[%c40_87, %c256_88], %74 {strides = array<i32>} : memref<72x512xf32, #tpu.memory_space<vmem>>, vector<8x256xf32>,
    %c224_i32_89 = arith.constant 224 : i32
    %76 = tpu.dynamic_rotate %64 by %c224_i32_89 dim 1 : vector<8x256xf32>, i32 -> vector<8x256xf32>
    %c48_90 = arith.constant 48 : index
    %c256_91 = arith.constant 256 : index
    %77 = vector.load %arg7[%c48_90, %c256_91] : memref<72x512xf32, #tpu.memory_space<vmem>>, vector<8x256xf32>
    tpu.vector_store %arg7[%c48_90, %c256_91], %76 {strides = array<i32>} : memref<72x512xf32, #tpu.memory_space<vmem>>, vector<8x256xf32>,
    %c223_i32_92 = arith.constant 223 : i32
    %78 = tpu.dynamic_rotate %64 by %c223_i32_92 dim 1 : vector<8x256xf32>, i32 -> vector<8x256xf32>
    %c56_93 = arith.constant 56 : index
    %c256_94 = arith.constant 256 : index
    %79 = vector.load %arg7[%c56_93, %c256_94] : memref<72x512xf32, #tpu.memory_space<vmem>>, vector<8x256xf32>
    tpu.vector_store %arg7[%c56_93, %c256_94], %78 {strides = array<i32>} : memref<72x512xf32, #tpu.memory_space<vmem>>, vector<8x256xf32>,
    %c222_i32_95 = arith.constant 222 : i32
    %80 = tpu.dynamic_rotate %64 by %c222_i32_95 dim 1 : vector<8x256xf32>, i32 -> vector<8x256xf32>
    %c64_96 = arith.constant 64 : index
    %c256_97 = arith.constant 256 : index
    %81 = vector.load %arg7[%c64_96, %c256_97] : memref<72x512xf32, #tpu.memory_space<vmem>>, vector<8x256xf32>
    tpu.vector_store %arg7[%c64_96, %c256_97], %80 {strides = array<i32>} : memref<72x512xf32, #tpu.memory_space<vmem>>, vector<8x256xf32>,
    %c0_98 = arith.constant 0 : index
    %c0_99 = arith.constant 0 : index
    %82 = vector.load %arg4[%c0_98, %c0_99] : memref<8x72xf32, #tpu.memory_space<vmem>>, vector<8x72xf32>
    %c0_100 = arith.constant 0 : index
    %c0_101 = arith.constant 0 : index
    %83 = vector.load %arg7[%c0_100, %c0_101] : memref<72x512xf32, #tpu.memory_space<vmem>>, vector<72x512xf32>
    %cst_102 = arith.constant dense<0.000000e+00> : vector<8x512xf32>
    %84 = tpu.matmul %82, %83, %cst_102 {dimension_numbers = #tpu.dot_dimension_numbers<[1], [0], [0], [1], [0, 0, 1, 1], [], []>} : vector<8x72xf32>, vector<72x512xf32>, vector<8x512xf32> -> vector<8x512xf32>
    %c0_103 = arith.constant 0 : index
    %c0_104 = arith.constant 0 : index
    %85 = vector.load %arg5[%c0_103, %c0_104] : memref<8x1xf32, #tpu.memory_space<vmem>>, vector<8x1xf32>
    %86 = vector.broadcast %85 : vector<8x1xf32> to vector<8x512xf32>
    %87 = arith.addf %84, %86 : vector<8x512xf32>
    %88 = vector.extract_strided_slice %87 {offsets = [0, 0], sizes = [8, 256], strides = [1, 1]} : vector<8x512xf32> to vector<8x256xf32>
    %c0_105 = arith.constant 0 : index
    %c0_106 = arith.constant 0 : index
    %c0_107 = arith.constant 0 : index
    %89 = vector.load %arg6[%c0_105, %c0_106, %c0_107] : memref<2x8x256xf32, #tpu.memory_space<vmem>>, vector<1x8x256xf32>
    %90 = vector.shape_cast %89 : vector<1x8x256xf32> to vector<8x256xf32>
    %91 = vector.shape_cast %88 : vector<8x256xf32> to vector<1x8x256xf32>
    tpu.vector_store %arg6[%c0_105, %c0_106, %c0_107], %91 {strides = array<i32>} : memref<2x8x256xf32, #tpu.memory_space<vmem>>, vector<1x8x256xf32>,
    %92 = vector.extract_strided_slice %87 {offsets = [0, 256], sizes = [8, 256], strides = [1, 1]} : vector<8x512xf32> to vector<8x256xf32>
    %c1_108 = arith.constant 1 : index
    %c0_109 = arith.constant 0 : index
    %c0_110 = arith.constant 0 : index
    %93 = vector.load %arg6[%c1_108, %c0_109, %c0_110] : memref<2x8x256xf32, #tpu.memory_space<vmem>>, vector<1x8x256xf32>
    %94 = vector.shape_cast %93 : vector<1x8x256xf32> to vector<8x256xf32>
    %95 = vector.shape_cast %92 : vector<8x256xf32> to vector<1x8x256xf32>
    tpu.vector_store %arg6[%c1_108, %c0_109, %c0_110], %95 {strides = array<i32>} : memref<2x8x256xf32, #tpu.memory_space<vmem>>, vector<1x8x256xf32>,
    return
  }
  func.func @transform_0(%arg0: i32) -> (i32, i32, i32) {
    %c0_i32 = arith.constant 0 : i32
    %c0_i32_0 = arith.constant 0 : i32
    %c0_i32_1 = arith.constant 0 : i32
    return %arg0, %c0_i32, %c0_i32_0 : i32, i32, i32
  }
  func.func @transform_1(%arg0: i32) -> (i32, i32) {
    %c0_i32 = arith.constant 0 : i32
    %c0_i32_0 = arith.constant 0 : i32
    %c0_i32_1 = arith.constant 0 : i32
    return %c0_i32, %c0_i32_0 : i32, i32
  }
  func.func @transform_2(%arg0: i32) -> (i32, i32) {
    %c0_i32 = arith.constant 0 : i32
    %c0_i32_0 = arith.constant 0 : i32
    %c0_i32_1 = arith.constant 0 : i32
    return %c0_i32, %c0_i32_0 : i32, i32
  }
  func.func @transform_3(%arg0: i32) -> (i32, i32) {
    %c0_i32 = arith.constant 0 : i32
    %c0_i32_0 = arith.constant 0 : i32
    %c0_i32_1 = arith.constant 0 : i32
    return %c0_i32, %c0_i32_0 : i32, i32
  }
  func.func @transform_4(%arg0: i32) -> (i32, i32) {
    %c0_i32 = arith.constant 0 : i32
    %c0_i32_0 = arith.constant 0 : i32
    %c0_i32_1 = arith.constant 0 : i32
    return %c0_i32, %c0_i32_0 : i32, i32
  }
  func.func @transform_5(%arg0: i32) -> (i32, i32, i32) {
    %c0_i32 = arith.constant 0 : i32
    %c0_i32_0 = arith.constant 0 : i32
    %c0_i32_1 = arith.constant 0 : i32
    return %arg0, %c0_i32, %c0_i32_0 : i32, i32, i32
  }
}

</mosaic_0001>

<bundles_post_ra>
// kernel: block_forward.1
= control target key start
LH: loop header
LB: loop body
LE: loop exit
PB: predicated region body
PF: predicated region fallthrough
CT: control target
= control target key end

     0   :  { %s912_s26 = smov 126   ;;  %s913_s27 = smov 127   ;;  %v917_v6 = vmov 0.0   ;;  %v920_v7 = vmov 0   ;;  %v28_v9 = vlaneseq  ;;  %vm210_vm8 = vcmask 588800   ;;  %s1185_s0 = inlined_call_operand.vmem [shape: f32[2,8,256], index: 0, kind: input, shape index: {}]   ;;  %s1186_s2 = inlined_call_operand.vmem [shape: f32[8,1], index: 2, kind: input, shape index: {}]   ;;  %s1187_s1 = inlined_call_operand.vmem [shape: f32[8,72], index: 1, kind: input, shape index: {}]   ;;  %s1188_s4 = inlined_call_operand.vmem [shape: f32[8,1], index: 4, kind: input, shape index: {}]   ;;  %s1189_s3 = inlined_call_operand.vmem [shape: f32[8,72], index: 3, kind: input, shape index: {}]   ;;  %s1190_s5 = inlined_call_operand.vmem [shape: f32[2,8,256], index: 5, kind: output, shape index: {}]  }
   0x1   :  { %v955_v0 = vld [vmem:[%s1185_s0] sm:$0xff]  ;;  %v21_v1 = vld [vmem:[%s1185_s0 + $0x8] sm:$0xff]  ;;  %v963_v2 = vld [vmem:[%s1185_s0 + $0x10] sm:$0xff]  ;;  %s914_s28 = smov 112   ;;  %s916_s29 = smov 111   ;;  %278 = vmatprep.mubr.f32.mxu0 %v917_v6  ;;  %349 = vmatprep.mubr.f32.mxu1 %v917_v6 }
   0x2   :  { %v781_v3 = vpack.i.bf16 %v21_v1, %v955_v0  ;;  %v969_v4 = vld [vmem:[%s1185_s0 + $0x18] sm:$0xff]  ;;  %s915_s0 = smov 110   ;;  %s918_s30 = smov 95   ;;  %841 = vset.pattern.permute.xlu0 %v920_v7  ;;  %v204_v8 = vld [vmem:[%s1186_s2] sm:$0xff]  ;;  %v999_v10 = vand.u32 127, %v28_v9 }
   0x3   :  { %v776_v5 = vpack.i.bf16 %v969_v4, %v963_v2  ;;  %s919_s6 = smov 96   ;;  %s921_s7 = smov 94  }
   0x4   :  { %782 = vrot.lane.b32.xlu1 %v781_v3, %s912_s26  ;;  %772 = vrot.lane.b32.xlu0 %v781_v3, %s913_s27  ;;  %vm30_vm0 = vcmp.lt.s32.totalorder %v999_v10, 127  ;;  %vm39_vm1 = vcmp.lt.s32.totalorder %v999_v10, 126  ;;  %vm48_vm2 = vcmp.lt.s32.totalorder %v999_v10, 112  ;;  %vm57_vm3 = vcmp.lt.s32.totalorder %v999_v10, 111 }
   0x5   :  { %vm66_vm4 = vcmp.lt.s32.totalorder %v999_v10, 110  ;;  %vm75_vm5 = vcmp.lt.s32.totalorder %v999_v10, 96  ;;  %vm84_vm6 = vcmp.lt.s32.totalorder %v999_v10, 95  ;;  %vm93_vm7 = vcmp.lt.s32.totalorder %v999_v10, 94 }
   0x8   :  { %787 = vrot.lane.b32.xlu1 %v781_v3, %s914_s28  ;;  %777 = vrot.lane.b32.xlu0 %v776_v5, %s913_s27 }
   0xc   :  { %797 = vrot.lane.b32.xlu1 %v776_v5, %s914_s28  ;;  %792 = vrot.lane.b32.xlu0 %v776_v5, %s912_s26 }
  0x10   :  { %807 = vrot.lane.b32.xlu1 %v781_v3, %s915_s0  ;;  %802 = vrot.lane.b32.xlu0 %v781_v3, %s916_s29 }
  0x14   :  { %817 = vrot.lane.b32.xlu1 %v776_v5, %s915_s0  ;;  %812 = vrot.lane.b32.xlu0 %v776_v5, %s916_s29 }
  0x18   :  { %827 = vrot.lane.b32.xlu1 %v781_v3, %s918_s30  ;;  %822 = vrot.lane.b32.xlu0 %v781_v3, %s919_s6 }
  0x1c   :  { %837 = vrot.lane.b32.xlu1 %v776_v5, %s918_s30  ;;  %832 = vrot.lane.b32.xlu0 %v776_v5, %s919_s6 }
  0x20   :  { %91 = vrot.lane.b32.xlu1 %v21_v1, %s921_s7  ;;  %89 = vrot.lane.b32.xlu0 %v955_v0, %s921_s7 }
  0x24   :  { %161 = vrot.lane.b32.xlu1 %v969_v4, %s921_s7  ;;  %159 = vrot.lane.b32.xlu0 %v963_v2, %s921_s7 }
  0x28   :  { %207 = vperm.xlu0 %841, %v204_v8  }
  0x76   :  { %v783_v11 = vpop.permute.xlu1 %782  ;;  %v773_v12 = vpop.permute.xlu0 %772 }
  0x77   :  { %v775_v13 = vunpack.i.h.bf16 %v773_v12  ;;  %v774_v14 = vunpack.i.l.bf16 %v773_v12  ;;  %v785_v15 = vunpack.i.h.bf16 %v783_v11  ;;  %v784_v16 = vunpack.i.l.bf16 %v783_v11 }
  0x79   :  { %v32_v17 = vsel %vm30_vm0, %v775_v13, %v774_v14  ;;  %v31_v18 = vsel %vm30_vm0, %v774_v14, %v775_v13  ;;  %v41_v27 = vsel %vm39_vm1, %v785_v15, %v784_v16  ;;  %v40_v28 = vsel %vm39_vm1, %v784_v16, %v785_v15 }
  0x7a   :  { %v788_v19 = vpop.permute.xlu1 %787  ;;  %v778_v20 = vpop.permute.xlu0 %777  ;;  %v697_v21 = vpack.c.bf16 %v32_v17, %v21_v1  ;;  %v699_v22 = vpack.c.bf16 %v31_v18, %v955_v0 }
  0x7b   :  { %v790_v23 = vunpack.i.h.bf16 %v788_v19  ;;  %v789_v24 = vunpack.i.l.bf16 %v788_v19  ;;  %v780_v25 = vunpack.i.h.bf16 %v778_v20  ;;  %v779_v26 = vunpack.i.l.bf16 %v778_v20 }
  0x7c   :  { %698 = vmatprep.subr.bf16.mxu0 %v697_v21 }
  0x7d   :  { %700 = vmatpush1.bf16.msra.mxu0 %v699_v22  ;;  %v50_v29 = vsel %vm48_vm2, %v790_v23, %v789_v24  ;;  %v108_v30 = vsel %vm30_vm0, %v780_v25, %v779_v26  ;;  %v49_v31 = vsel %vm48_vm2, %v789_v24, %v790_v23  ;;  %v107_v32 = vsel %vm30_vm0, %v779_v26, %v780_v25 }
  0x7e   :  { %v798_v33 = vpop.permute.xlu1 %797  ;;  %v793_v34 = vpop.permute.xlu0 %792  ;;  %v701_v35 = vpack.c.bf16 %v50_v29, %v41_v27  ;;  %v713_v36 = vpack.c.bf16 %v108_v30, %v969_v4  ;;  %v703_v37 = vpack.c.bf16 %v49_v31, %v40_v28  ;;  %v715_v38 = vpack.c.bf16 %v107_v32, %v963_v2 }
  0x7f   :  { %v800_v39 = vunpack.i.h.bf16 %v798_v33  ;;  %v799_v40 = vunpack.i.l.bf16 %v798_v33  ;;  %v795_v41 = vunpack.i.h.bf16 %v793_v34  ;;  %v794_v42 = vunpack.i.l.bf16 %v793_v34 }
  0x80   :  { %702 = vmatprep.subr.bf16.mxu0 %v701_v35  ;;  %714 = vmatprep.subr.bf16.mxu1 %v713_v36 }
  0x81   :  { %704 = vmatpush1.bf16.msra.mxu0 %v703_v37  ;;  %716 = vmatpush1.bf16.msra.mxu1 %v715_v38  ;;  %v116_v43 = vsel %vm39_vm1, %v795_v41, %v794_v42  ;;  %v124_v44 = vsel %vm48_vm2, %v800_v39, %v799_v40  ;;  %v115_v45 = vsel %vm39_vm1, %v794_v42, %v795_v41 }
  0x82   :  { %v808_v46 = vpop.permute.xlu1 %807  ;;  %v803_v47 = vpop.permute.xlu0 %802  ;;  %v717_v48 = vpack.c.bf16 %v124_v44, %v116_v43  ;;  %v123_v49 = vsel %vm48_vm2, %v799_v40, %v800_v39  ;;  %v167_v39 = vld [vmem:[%s1187_s1] sm:$0xff] }
  0x83   :  { %v810_v50 = vunpack.i.h.bf16 %v808_v46  ;;  %v809_v51 = vunpack.i.l.bf16 %v808_v46  ;;  %v805_v52 = vunpack.i.h.bf16 %v803_v47  ;;  %v804_v53 = vunpack.i.l.bf16 %v803_v47 }
  0x84   :  { %718 = vmatprep.subr.bf16.mxu1 %v717_v48  ;;  %v719_v54 = vpack.c.bf16 %v123_v49, %v115_v45 }
  0x85   :  { %v59_v55 = vsel %vm57_vm3, %v805_v52, %v804_v53  ;;  %v68_v56 = vsel %vm66_vm4, %v810_v50, %v809_v51  ;;  %v58_v57 = vsel %vm57_vm3, %v804_v53, %v805_v52  ;;  %v67_v58 = vsel %vm66_vm4, %v809_v51, %v810_v50 }
  0x86   :  { %720 = vmatpush1.bf16.msra.mxu1 %v719_v54  ;;  %v818_v59 = vpop.permute.xlu1 %817  ;;  %v813_v60 = vpop.permute.xlu0 %812  ;;  %v705_v61 = vpack.c.bf16 %v68_v56, %v59_v55  ;;  %v707_v62 = vpack.c.bf16 %v67_v58, %v58_v57 }
  0x87   :  { %v820_v63 = vunpack.i.h.bf16 %v818_v59  ;;  %v819_v0 = vunpack.i.l.bf16 %v818_v59  ;;  %v815_v1 = vunpack.i.h.bf16 %v813_v60  ;;  %v814_v2 = vunpack.i.l.bf16 %v813_v60 }
  0x88   :  { %706 = vmatprep.subr.bf16.mxu0 %v705_v61 }
  0x89   :  { %708 = vmatpush1.bf16.msra.mxu0 %v707_v62  ;;  %v132_v3 = vsel %vm57_vm3, %v815_v1, %v814_v2  ;;  %v140_v4 = vsel %vm66_vm4, %v820_v63, %v819_v0  ;;  %v131_v5 = vsel %vm57_vm3, %v814_v2, %v815_v1  ;;  %v139_v7 = vsel %vm66_vm4, %v819_v0, %v820_v63 }
  0x8a   :  { %v828_v8 = vpop.permute.xlu1 %827  ;;  %v823_v9 = vpop.permute.xlu0 %822  ;;  %v721_v11 = vpack.c.bf16 %v140_v4, %v132_v3  ;;  %v723_v12 = vpack.c.bf16 %v139_v7, %v131_v5 }
  0x8b   :  { %v830_v13 = vunpack.i.h.bf16 %v828_v8  ;;  %v829_v14 = vunpack.i.l.bf16 %v828_v8  ;;  %v825_v15 = vunpack.i.h.bf16 %v823_v9  ;;  %v824_v16 = vunpack.i.l.bf16 %v823_v9 }
  0x8c   :  { %722 = vmatprep.subr.bf16.mxu1 %v721_v11 }
  0x8d   :  { %724 = vmatpush1.bf16.msra.mxu1 %v723_v12  ;;  %v77_v17 = vsel %vm75_vm5, %v825_v15, %v824_v16  ;;  %v86_v18 = vsel %vm84_vm6, %v830_v13, %v829_v14  ;;  %v76_v19 = vsel %vm75_vm5, %v824_v16, %v825_v15  ;;  %v85_v20 = vsel %vm84_vm6, %v829_v14, %v830_v13 }
  0x8e   :  { %v838_v21 = vpop.permute.xlu1 %837  ;;  %v833_v22 = vpop.permute.xlu0 %832  ;;  %v709_v23 = vpack.c.bf16 %v86_v18, %v77_v17  ;;  %v711_v24 = vpack.c.bf16 %v85_v20, %v76_v19 }
  0x8f   :  { %v840_v25 = vunpack.i.h.bf16 %v838_v21  ;;  %v839_v26 = vunpack.i.l.bf16 %v838_v21  ;;  %v835_v27 = vunpack.i.h.bf16 %v833_v22  ;;  %v834_v28 = vunpack.i.l.bf16 %v833_v22 }
  0x90   :  { %710 = vmatprep.subr.bf16.mxu0 %v709_v23 }
  0x91   :  { %712 = vmatpush1.bf16.msra.mxu0 %v711_v24  ;;  %v148_v29 = vsel %vm75_vm5, %v835_v27, %v834_v28  ;;  %v156_v30 = vsel %vm84_vm6, %v840_v25, %v839_v26  ;;  %v147_v31 = vsel %vm75_vm5, %v834_v28, %v835_v27  ;;  %v155_v32 = vsel %vm84_vm6, %v839_v26, %v840_v25 }
  0x92   :  { %v92_v33 = vpop.permute.xlu1 %91  ;;  %v90_v34 = vpop.permute.xlu0 %89  ;;  %v725_v35 = vpack.c.bf16 %v156_v30, %v148_v29  ;;  %v727_v36 = vpack.c.bf16 %v155_v32, %v147_v31 }
  0x93   :  { %v95_v37 = vsel %vm93_vm7, %v92_v33, %v90_v34  ;;  %v94_v38 = vsel %vm93_vm7, %v90_v34, %v92_v33 }
  0x94   :  { %230 = vmatprep.subr.mxu0 %v95_v37  ;;  %726 = vmatprep.subr.bf16.mxu1 %v725_v35 }
  0x95   :  { %231 = vmatpush1.msra.mxu0 %v94_v38  ;;  %728 = vmatpush1.bf16.msra.mxu1 %v727_v36 }
  0x96   :  { %v162_v40 = vpop.permute.xlu1 %161  ;;  %v160_v41 = vpop.permute.xlu0 %159  ;;  %691 = vmatmul.mubr.msk.f32.vlgmr.msra.gmra.mrb[0].mxu0 %vm210_vm8, %v167_v39 }
  0x97   :  { %v164_v42 = vsel %vm93_vm7, %v162_v40, %v160_v41  ;;  %v163_v43 = vsel %vm93_vm7, %v160_v41, %v162_v40  ;;  %602 = vmatprep.mubr.f32.mxu0 %v917_v6 }
  0x98   :  { %301 = vmatprep.subr.mxu1 %v164_v42 }
  0x99   :  { %302 = vmatpush1.msra.mxu1 %v163_v43 }
  0x9a   :  { %692 = vmatmul.mubr.msk.f32.vlgmr.msra.gmra.mrb[0].mxu1 %vm210_vm8, %v167_v39 }
  0x9b   :  { %673 = vmatprep.mubr.f32.mxu1 %v917_v6  ;;  %v529_v6 = vld [vmem:[%s1188_s4] sm:$0xff] }
  0xa7   :  { %v208_v44 = vpop.permute.xlu0 %207 }
 0x169   :  { %v280_v45 = vpop.f32.mrb[0].mxu0 }
 0x16a   :  { %v281_v46 = vadd.f32 %v280_v45, %v208_v44  ;;  %v282_v47 = vpop.f32.mrb[1].mxu0 }
 0x16b   :  { %v283_v48 = vadd.f32 %v282_v47, %v208_v44 }
 0x16c   :  { %v356_v49 = vmax.f32 %v281_v46, 0.0 }
 0x16d   :  { %v357_v50 = vmax.f32 %v283_v48, 0.0  ;;  %v351_v51 = vpop.f32.mrb[0].mxu1 }
 0x16e   :  { %v352_v52 = vadd.f32 %v351_v51, %v208_v44  ;;  %v353_v53 = vpop.f32.mrb[1].mxu1 }
 0x16f   :  { %v354_v54 = vadd.f32 %v353_v53, %v208_v44  ;;  %v852_v55 = vpack.i.bf16 %v357_v50, %v356_v49 }
 0x170   :  { %v358_v56 = vmax.f32 %v352_v52, 0.0 }
 0x171   :  { %v359_v57 = vmax.f32 %v354_v54, 0.0  ;;  %853 = vrot.lane.b32.xlu0 %v852_v55, %s912_s26  ;;  %843 = vrot.lane.b32.xlu1 %v852_v55, %s913_s27 }
 0x173   :  { %v862_v58 = vpack.i.bf16 %v359_v57, %v358_v56 }
 0x175   :  { %863 = vrot.lane.b32.xlu0 %v862_v58, %s912_s26  ;;  %848 = vrot.lane.b32.xlu1 %v862_v58, %s913_s27 }
 0x179   :  { %873 = vrot.lane.b32.xlu0 %v852_v55, %s916_s29  ;;  %858 = vrot.lane.b32.xlu1 %v852_v55, %s914_s28 }
 0x17d   :  { %883 = vrot.lane.b32.xlu0 %v862_v58, %s916_s29  ;;  %868 = vrot.lane.b32.xlu1 %v862_v58, %s914_s28 }
 0x181   :  { %893 = vrot.lane.b32.xlu0 %v852_v55, %s919_s6  ;;  %878 = vrot.lane.b32.xlu1 %v852_v55, %s915_s0 }
 0x185   :  { %903 = vrot.lane.b32.xlu0 %v862_v58, %s919_s6  ;;  %888 = vrot.lane.b32.xlu1 %v862_v58, %s915_s0 }
 0x189   :  { %418 = vrot.lane.b32.xlu0 %v356_v49, %s921_s7  ;;  %898 = vrot.lane.b32.xlu1 %v852_v55, %s918_s30 }
 0x18d   :  { %484 = vrot.lane.b32.xlu0 %v358_v56, %s921_s7  ;;  %908 = vrot.lane.b32.xlu1 %v862_v58, %s918_s30 }
 0x191   :  { %532 = vperm.xlu0 %841, %v529_v6   ;;  %420 = vrot.lane.b32.xlu1 %v357_v50, %s921_s7 }
 0x195   :  { %486 = vrot.lane.b32.xlu1 %v359_v57, %s921_s7 }
 0x1e3   :  { %v854_v59 = vpop.permute.xlu0 %853  ;;  %v844_v60 = vpop.permute.xlu1 %843 }
 0x1e4   :  { %v846_v61 = vunpack.i.h.bf16 %v844_v60  ;;  %v845_v62 = vunpack.i.l.bf16 %v844_v60  ;;  %v856_v8 = vunpack.i.h.bf16 %v854_v59  ;;  %v855_v9 = vunpack.i.l.bf16 %v854_v59 }
 0x1e6   :  { %v366_v63 = vsel %vm30_vm0, %v845_v62, %v846_v61  ;;  %v367_v0 = vsel %vm30_vm0, %v846_v61, %v845_v62  ;;  %v374_v19 = vsel %vm39_vm1, %v855_v9, %v856_v8  ;;  %v375_v20 = vsel %vm39_vm1, %v856_v8, %v855_v9 }
 0x1e7   :  { %v731_v1 = vpack.c.bf16 %v366_v63, %v356_v49  ;;  %v864_v2 = vpop.permute.xlu0 %863  ;;  %v849_v3 = vpop.permute.xlu1 %848  ;;  %v729_v4 = vpack.c.bf16 %v367_v0, %v357_v50 }
 0x1e8   :  { %v851_v5 = vunpack.i.h.bf16 %v849_v3  ;;  %v850_v7 = vunpack.i.l.bf16 %v849_v3  ;;  %v866_v21 = vunpack.i.h.bf16 %v864_v2  ;;  %v865_v22 = vunpack.i.l.bf16 %v864_v2 }
 0x1e9   :  { %730 = vmatprep.subr.bf16.mxu0 %v729_v4 }
 0x1ea   :  { %v432_v11 = vsel %vm30_vm0, %v850_v7, %v851_v5  ;;  %732 = vmatpush1.bf16.msra.mxu0 %v731_v1  ;;  %v433_v12 = vsel %vm30_vm0, %v851_v5, %v850_v7  ;;  %v440_v33 = vsel %vm39_vm1, %v865_v22, %v866_v21  ;;  %v441_v35 = vsel %vm39_vm1, %v866_v21, %v865_v22 }
 0x1eb   :  { %v747_v13 = vpack.c.bf16 %v432_v11, %v358_v56  ;;  %v874_v14 = vpop.permute.xlu0 %873  ;;  %v859_v15 = vpop.permute.xlu1 %858  ;;  %v745_v16 = vpack.c.bf16 %v433_v12, %v359_v57 }
 0x1ec   :  { %v861_v17 = vunpack.i.h.bf16 %v859_v15  ;;  %v860_v18 = vunpack.i.l.bf16 %v859_v15  ;;  %v876_v31 = vunpack.i.h.bf16 %v874_v14  ;;  %v875_v32 = vunpack.i.l.bf16 %v874_v14 }
 0x1ed   :  { %746 = vmatprep.subr.bf16.mxu1 %v745_v16 }
 0x1ee   :  { %v382_v23 = vsel %vm48_vm2, %v860_v18, %v861_v17  ;;  %748 = vmatpush1.bf16.msra.mxu1 %v747_v13  ;;  %v383_v24 = vsel %vm48_vm2, %v861_v17, %v860_v18  ;;  %v390_v42 = vsel %vm57_vm3, %v875_v32, %v876_v31  ;;  %v391_v44 = vsel %vm57_vm3, %v876_v31, %v875_v32 }
 0x1ef   :  { %v735_v25 = vpack.c.bf16 %v382_v23, %v374_v19  ;;  %v884_v26 = vpop.permute.xlu0 %883  ;;  %v869_v27 = vpop.permute.xlu1 %868  ;;  %v733_v28 = vpack.c.bf16 %v383_v24, %v375_v20  ;;  %v492_v24 = vld [vmem:[%s1189_s3] sm:$0xff] }
 0x1f0   :  { %v871_v29 = vunpack.i.h.bf16 %v869_v27  ;;  %v870_v30 = vunpack.i.l.bf16 %v869_v27  ;;  %v886_v45 = vunpack.i.h.bf16 %v884_v26  ;;  %v885_v46 = vunpack.i.l.bf16 %v884_v26 }
 0x1f1   :  { %734 = vmatprep.subr.bf16.mxu0 %v733_v28 }
 0x1f2   :  { %v448_v34 = vsel %vm48_vm2, %v870_v30, %v871_v29  ;;  %736 = vmatpush1.bf16.msra.mxu0 %v735_v25  ;;  %v449_v36 = vsel %vm48_vm2, %v871_v29, %v870_v30  ;;  %v456_v56 = vsel %vm57_vm3, %v885_v46, %v886_v45  ;;  %v457_v58 = vsel %vm57_vm3, %v886_v45, %v885_v46 }
 0x1f3   :  { %v751_v37 = vpack.c.bf16 %v448_v34, %v440_v33  ;;  %v879_v38 = vpop.permute.xlu1 %878  ;;  %v749_v39 = vpack.c.bf16 %v449_v36, %v441_v35  ;;  %v894_v43 = vpop.permute.xlu0 %893 }
 0x1f4   :  { %v881_v40 = vunpack.i.h.bf16 %v879_v38  ;;  %v880_v41 = vunpack.i.l.bf16 %v879_v38  ;;  %v896_v54 = vunpack.i.h.bf16 %v894_v43  ;;  %v895_v55 = vunpack.i.l.bf16 %v894_v43 }
 0x1f5   :  { %750 = vmatprep.subr.bf16.mxu1 %v749_v39 }
 0x1f6   :  { %v398_v47 = vsel %vm66_vm4, %v880_v41, %v881_v40  ;;  %752 = vmatpush1.bf16.msra.mxu1 %v751_v37  ;;  %v399_v48 = vsel %vm66_vm4, %v881_v40, %v880_v41  ;;  %v406_v1 = vsel %vm75_vm5, %v895_v55, %v896_v54  ;;  %v407_v2 = vsel %vm75_vm5, %v896_v54, %v895_v55 }
 0x1f7   :  { %v739_v49 = vpack.c.bf16 %v398_v47, %v390_v42  ;;  %v889_v50 = vpop.permute.xlu1 %888  ;;  %v737_v51 = vpack.c.bf16 %v399_v48, %v391_v44  ;;  %v904_v59 = vpop.permute.xlu0 %903 }
 0x1f8   :  { %v891_v52 = vunpack.i.h.bf16 %v889_v50  ;;  %v890_v53 = vunpack.i.l.bf16 %v889_v50  ;;  %v906_v3 = vunpack.i.h.bf16 %v904_v59  ;;  %v905_v4 = vunpack.i.l.bf16 %v904_v59 }
 0x1f9   :  { %738 = vmatprep.subr.bf16.mxu0 %v737_v51 }
 0x1fa   :  { %v464_v57 = vsel %vm66_vm4, %v890_v53, %v891_v52  ;;  %740 = vmatpush1.bf16.msra.mxu0 %v739_v49  ;;  %v465_v6 = vsel %vm66_vm4, %v891_v52, %v890_v53  ;;  %v472_v15 = vsel %vm75_vm5, %v905_v4, %v906_v3  ;;  %v473_v17 = vsel %vm75_vm5, %v906_v3, %v905_v4 }
 0x1fb   :  { %v755_v60 = vpack.c.bf16 %v464_v57, %v456_v56  ;;  %v899_v61 = vpop.permute.xlu1 %898  ;;  %v753_v62 = vpack.c.bf16 %v465_v6, %v457_v58  ;;  %v419_v14 = vpop.permute.xlu0 %418 }
 0x1fc   :  { %v901_v63 = vunpack.i.h.bf16 %v899_v61  ;;  %v900_v0 = vunpack.i.l.bf16 %v899_v61 }
 0x1fd   :  { %754 = vmatprep.subr.bf16.mxu1 %v753_v62 }
 0x1fe   :  { %v414_v5 = vsel %vm84_vm6, %v900_v0, %v901_v63  ;;  %756 = vmatpush1.bf16.msra.mxu1 %v755_v60  ;;  %v415_v7 = vsel %vm84_vm6, %v901_v63, %v900_v0 }
 0x1ff   :  { %v743_v8 = vpack.c.bf16 %v414_v5, %v406_v1  ;;  %v909_v9 = vpop.permute.xlu1 %908  ;;  %v741_v11 = vpack.c.bf16 %v415_v7, %v407_v2  ;;  %v485_v25 = vpop.permute.xlu0 %484 }
 0x200   :  { %v911_v12 = vunpack.i.h.bf16 %v909_v9  ;;  %v910_v13 = vunpack.i.l.bf16 %v909_v9 }
 0x201   :  { %742 = vmatprep.subr.bf16.mxu0 %v741_v11 }
 0x202   :  { %v480_v16 = vsel %vm84_vm6, %v910_v13, %v911_v12  ;;  %744 = vmatpush1.bf16.msra.mxu0 %v743_v8  ;;  %v481_v18 = vsel %vm84_vm6, %v911_v12, %v910_v13 }
 0x203   :  { %v759_v19 = vpack.c.bf16 %v480_v16, %v472_v15  ;;  %v421_v20 = vpop.permute.xlu1 %420  ;;  %v757_v21 = vpack.c.bf16 %v481_v18, %v473_v17 }
 0x204   :  { %v422_v22 = vsel %vm93_vm7, %v419_v14, %v421_v20  ;;  %v423_v23 = vsel %vm93_vm7, %v421_v20, %v419_v14 }
 0x205   :  { %554 = vmatprep.subr.mxu0 %v423_v23  ;;  %758 = vmatprep.subr.bf16.mxu1 %v757_v21 }
 0x206   :  { %555 = vmatpush1.msra.mxu0 %v422_v22  ;;  %760 = vmatpush1.bf16.msra.mxu1 %v759_v19 }
 0x207   :  { %v487_v26 = vpop.permute.xlu1 %486  ;;  %693 = vmatmul.mubr.msk.f32.vlgmr.msra.gmra.mrb[2].mxu0 %vm210_vm8, %v492_v24 }
 0x208   :  { %v488_v27 = vsel %vm93_vm7, %v485_v25, %v487_v26  ;;  %v489_v28 = vsel %vm93_vm7, %v487_v26, %v485_v25 }
 0x209   :  { %625 = vmatprep.subr.mxu1 %v489_v28 }
 0x20a   :  { %626 = vmatpush1.msra.mxu1 %v488_v27 }
 0x20b   :  { %694 = vmatmul.mubr.msk.f32.vlgmr.msra.gmra.mrb[2].mxu1 %vm210_vm8, %v492_v24 }
 0x210   :  { %v533_v29 = vpop.permute.xlu0 %532 }
 0x2da   :  { %v604_v30 = vpop.f32.mrb[2].mxu0 }
 0x2db   :  { %v605_v31 = vadd.f32 %v604_v30, %v533_v29  ;;  %v606_v32 = vpop.f32.mrb[3].mxu0 }
 0x2dc   :  { %v607_v33 = vadd.f32 %v606_v32, %v533_v29 }
 0x2dd   :  { %680 = vst [vmem:[%s1190_s5] sm:$0xff] %v605_v31 }
 0x2de   :  { %681 = vst [vmem:[%s1190_s5 + $0x8] sm:$0xff] %v607_v33  ;;  %v675_v34 = vpop.f32.mrb[2].mxu1 }
 0x2df   :  { %v676_v10 = vadd.f32 %v675_v34, %v533_v29  ;;  %v677_v35 = vpop.f32.mrb[3].mxu1 }
 0x2e0   :  { %v678_v36 = vadd.f32 %v677_v35, %v533_v29 }
 0x2e1   :  { %695 = vst [vmem:[%s1190_s5 + $0x10] sm:$0xff] %v676_v10 }
 0x2e2   :  { %696 = vst [vmem:[%s1190_s5 + $0x18] sm:$0xff] %v678_v36 }

</bundles_post_ra>
